<compile_context>
chip_gen: v5e
topology: v5e:2x2
jax: 0.10.0
libtpu: 0.0.40
codegen_flags: <defaults>
</compile_context>

<pallas_src>
import functools

import jax
import jax.numpy as jnp
from jax.experimental import pallas as pl
from jax.experimental.pallas import tpu as pltpu

ALPHA = 0.97


def _preemphasis_kernel(x_ref, tail_ref, seed0_ref, o_ref, *, alpha):
    t = pl.program_id(1)                     # time-tile index
    x = x_ref[...]                           # (bt, tt)
    tt = x.shape[1]
    a = jnp.float32(alpha)

    # Sample just before this tile's first column:
    #   t == 0 : seed column (zero for true row starts; previous row's last
    #            sample for sublane-folded rows).
    #   t  > 0 : last column of the (bt, tail_w) window that ends exactly at
    #            the previous time tile's last column.
    tw = tail_ref.shape[1]
    prev_tail = tail_ref[:, tw - 1:tw]                           # (bt, 1)
    seed = jnp.where(t == 0, seed0_ref[...], prev_tail).astype(jnp.float32)

    xf = x.astype(jnp.float32)
    if tt % 128 == 0:
        # Lane shift on the XLU; column 0 patched with a single masked store.
        prev = pltpu.roll(x, shift=1, axis=1).astype(jnp.float32)
        o_ref[...] = (xf - a * prev).astype(o_ref.dtype)
        o_ref[:, 0:1] = (xf[:, 0:1] - a * seed).astype(o_ref.dtype)
    else:
        # Non-128-aligned width only occurs on the small single-time-tile
        # path; use the simple (known-good) concat form there.
        prev = jnp.concatenate([seed, xf[:, :tt - 1]], axis=1)
        o_ref[...] = (xf - a * prev).astype(o_ref.dtype)


def pre_emphasis(x, alpha=ALPHA, *, b_tile=8, t_tile=64 * 1024,
                 fold_sublanes=True, min_fold_len=512,
                 vmem_limit_bytes=32 * 1024 * 1024):
    """x: (B, T) float array -> (B, T) pre-emphasized signal."""
    B, T = x.shape
    dtype = x.dtype

    b_tile = max(8, (b_tile // 8) * 8)
    t_tile = max(128, (t_tile // 128) * 128)

    # --- Small-batch sublane folding (free reshape, no data movement). ------
    n_fold = 1
    if fold_sublanes and B < 8 and T > 0:
        cand = max(1, 8 // B)
        while cand > 1 and T % cand != 0:
            cand -= 1
        if cand > 1 and (T // cand) >= min_fold_len:
            n_fold = cand

    if n_fold > 1:
        Bk, Tk = B * n_fold, T // n_fold
        xk = x.reshape(Bk, Tk)
        # Seed for column 0 of every (folded) row: previous row's last sample
        # within the same original batch row, zero at true row starts.
        last = xk[:, Tk - 1:Tk]                                   # (Bk, 1)
        seed0 = jnp.concatenate([jnp.zeros((1, 1), dtype), last[:-1, :]],
                                axis=0)
        row_start = (jnp.arange(Bk) % n_fold) == 0
        seed0 = jnp.where(row_start[:, None], jnp.zeros_like(seed0), seed0)
    else:
        Bk, Tk = B, T
        xk = x
        seed0 = jnp.zeros((B, 1), dtype)

    # --- Tiling (never pad the big array; ragged last blocks are masked). ---
    bt = Bk if Bk < 8 else min(b_tile, (Bk // 8) * 8)
    tt = Tk if Tk <= t_tile else t_tile
    n_bt = pl.cdiv(Bk, bt)
    n_tt = pl.cdiv(Tk, tt)

    tail_w = 128 if Tk >= 128 else Tk            # never exceeds the array dim
    tail_bpt = max(tt // tail_w, 1)              # tail blocks per x time-tile

    x_map = lambda b, t: (b, t)
    tail_map = lambda b, t: (b, jnp.maximum(t * tail_bpt - 1, 0))
    seed_map = lambda b, t: (b, 0)

    out = pl.pallas_call(
        functools.partial(_preemphasis_kernel, alpha=alpha),
        out_shape=jax.ShapeDtypeStruct((Bk, Tk), dtype),
        grid=(n_bt, n_tt),
        in_specs=[
            pl.BlockSpec((bt, tt), x_map),        # main stream
            pl.BlockSpec((bt, tail_w), tail_map), # tail of previous time tile
            pl.BlockSpec((bt, 1), seed_map),      # column-0 seed per row
        ],
        out_specs=pl.BlockSpec((bt, tt), x_map),
        compiler_params=pltpu.CompilerParams(
            dimension_semantics=("parallel", "parallel"),
            vmem_limit_bytes=vmem_limit_bytes,
        ),
        cost_estimate=pl.CostEstimate(
            flops=2 * Bk * Tk,
            transcendentals=0,
            bytes_accessed=2 * Bk * Tk * x.dtype.itemsize,
        ),
    )(xk, xk, seed0)

    if n_fold > 1:
        out = out.reshape(B, T)
    return out


def pre_emphasis_ref(x, alpha=ALPHA):
    """Pure-JAX reference (mirrors the PyTorch forward)."""
    prev = jnp.pad(x, ((0, 0), (1, 0)))[:, :-1]
    return x - alpha * prev


if __name__ == "__main__":
    key = jax.random.PRNGKey(0)
    k1, k2, k3 = jax.random.split(key, 3)

    # 1) Module-consistent small shape (batch=2 waveform): single-tile path.
    B, T = 2, 256
    x = jax.random.normal(k1, (B, T), dtype=jnp.float32)
    y = jax.block_until_ready(pre_emphasis(x))
    assert y.shape == (B, T)
    assert jnp.allclose(y, pre_emphasis_ref(x), atol=1e-6, rtol=1e-6)

    # 2) Small batch + longer signal: exercises the sublane fold
    #    (2x4000 -> 8x1000), the tail-window seed across time tiles, the
    #    cross-row seed column, and a ragged last time tile (1000 = 2*384+232).
    B2, T2 = 2, 4000
    x2 = jax.random.normal(k2, (B2, T2), dtype=jnp.float32)
    y2 = jax.block_until_ready(pre_emphasis(x2, t_tile=384))
    assert y2.shape == (B2, T2)
    assert jnp.allclose(y2, pre_emphasis_ref(x2), atol=1e-6, rtol=1e-6)

    # 3) Ragged batch and ragged time without the fold: 10x700 over (8, 256)
    #    tiles (2 batch tiles x 3 time tiles, both with masked last blocks).
    B3, T3 = 10, 700
    x3 = jax.random.normal(k3, (B3, T3), dtype=jnp.float32)
    y3 = jax.block_until_ready(pre_emphasis(x3, t_tile=256))
    assert y3.shape == (B3, T3)
    assert jnp.allclose(y3, pre_emphasis_ref(x3), atol=1e-6, rtol=1e-6)

    print("KERNEL_OK")
</pallas_src>

<mosaic_0001>
module attributes {stable_mosaic.version = 11 : i64} {
  func.func @_preemphasis_kernel(%arg0: i32, %arg1: i32, %arg2: memref<2x256xf32, #tpu.memory_space<vmem>>, %arg3: memref<2x128xf32, #tpu.memory_space<vmem>>, %arg4: memref<2x1xf32, #tpu.memory_space<vmem>>, %arg5: memref<2x256xf32, #tpu.memory_space<vmem>>) attributes {dimension_semantics = [#tpu.dimension_semantics<parallel>, #tpu.dimension_semantics<parallel>], iteration_bounds = array<i64: 1, 1>, scalar_prefetch = 0 : i64, scratch_operands = 0 : i64, tpu.core_type = #tpu.core_type<tc>, window_params = [{transform_indices = @transform_0, window_bounds = array<i64: 2, 256>}, {transform_indices = @transform_1, window_bounds = array<i64: 2, 128>}, {transform_indices = @transform_2, window_bounds = array<i64: 2, 1>}, {transform_indices = @transform_3, window_bounds = array<i64: 2, 256>}]} {
    %c0 = arith.constant 0 : index
    %c0_0 = arith.constant 0 : index
    %0 = vector.load %arg2[%c0, %c0_0] : memref<2x256xf32, #tpu.memory_space<vmem>>, vector<2x256xf32>
    %c0_1 = arith.constant 0 : index
    %c127 = arith.constant 127 : index
    %1 = vector.load %arg3[%c0_1, %c127] : memref<2x128xf32, #tpu.memory_space<vmem>>, vector<2x1xf32>
    %c0_i32 = arith.constant 0 : i32
    %2 = arith.cmpi eq, %arg1, %c0_i32 : i32
    %c0_2 = arith.constant 0 : index
    %c0_3 = arith.constant 0 : index
    %3 = vector.load %arg4[%c0_2, %c0_3] : memref<2x1xf32, #tpu.memory_space<vmem>>, vector<2x1xf32>
    %4 = arith.select %2, %3, %1 : vector<2x1xf32>
    %c1_i32 = arith.constant 1 : i32
    %5 = tpu.dynamic_rotate %0 by %c1_i32 dim 1 : vector<2x256xf32>, i32 -> vector<2x256xf32>
    %cst = arith.constant 9.700000e-01 : f32
    %6 = vector.broadcast %cst : f32 to vector<2x256xf32>
    %7 = arith.mulf %6, %5 : vector<2x256xf32>
    %8 = arith.subf %0, %7 : vector<2x256xf32>
    %c0_4 = arith.constant 0 : index
    %c0_5 = arith.constant 0 : index
    %9 = vector.load %arg5[%c0_4, %c0_5] : memref<2x256xf32, #tpu.memory_space<vmem>>, vector<2x256xf32>
    tpu.vector_store %arg5[%c0_4, %c0_5], %8 {strides = array<i32>} : memref<2x256xf32, #tpu.memory_space<vmem>>, vector<2x256xf32>,
    %10 = vector.extract_strided_slice %0 {offsets = [0, 0], sizes = [2, 1], strides = [1, 1]} : vector<2x256xf32> to vector<2x1xf32>
    %cst_6 = arith.constant 9.700000e-01 : f32
    %11 = vector.broadcast %cst_6 : f32 to vector<2x1xf32>
    %12 = arith.mulf %11, %4 : vector<2x1xf32>
    %13 = arith.subf %10, %12 : vector<2x1xf32>
    %c0_7 = arith.constant 0 : index
    %c0_8 = arith.constant 0 : index
    %14 = vector.load %arg5[%c0_7, %c0_8] : memref<2x256xf32, #tpu.memory_space<vmem>>, vector<2x1xf32>
    tpu.vector_store %arg5[%c0_7, %c0_8], %13 {strides = array<i32>} : memref<2x256xf32, #tpu.memory_space<vmem>>, vector<2x1xf32>,
    return
  }
  func.func @transform_0(%arg0: i32, %arg1: i32) -> (i32, i32) {
    %c0_i32 = arith.constant 0 : i32
    return %arg0, %arg1 : i32, i32
  }
  func.func @transform_1(%arg0: i32, %arg1: i32) -> (i32, i32) {
    %c2_i32 = arith.constant 2 : i32
    %0 = arith.muli %arg1, %c2_i32 : i32
    %c1_i32 = arith.constant 1 : i32
    %1 = arith.subi %0, %c1_i32 : i32
    %c0_i32 = arith.constant 0 : i32
    %2 = arith.maxsi %1, %c0_i32 : i32
    %c0_i32_0 = arith.constant 0 : i32
    return %arg0, %2 : i32, i32
  }
  func.func @transform_2(%arg0: i32, %arg1: i32) -> (i32, i32) {
    %c0_i32 = arith.constant 0 : i32
    %c0_i32_0 = arith.constant 0 : i32
    return %arg0, %c0_i32 : i32, i32
  }
  func.func @transform_3(%arg0: i32, %arg1: i32) -> (i32, i32) {
    %c0_i32 = arith.constant 0 : i32
    return %arg0, %arg1 : i32, i32
  }
}

</mosaic_0001>

<bundles_post_ra>
// kernel: tpu_custom_call.1
= control target key start
LH: loop header
LB: loop body
LE: loop exit
PB: predicated region body
PF: predicated region fallthrough
CT: control target
= control target key end

     0   :  { %8 = vsyncpa [#allocation3], 0  ;;  %s232_s0 = inlined_call_operand.hbm [shape: f32[2,256], index: 0, kind: input, shape index: {}]   ;;  %s233_s1 = inlined_call_operand.hbm [shape: f32[2,256], index: 1, kind: input, shape index: {}]   ;;  %s234_s2 = inlined_call_operand.vmem [shape: f32[2,1], index: 2, kind: input, shape index: {}]   ;;  %s235_s3 = inlined_call_operand.hbm [shape: f32[2,256], index: 3, kind: output, shape index: {}]  }
   0x1   :  { %9 = vsyncpa [#allocation6], 0 }
   0x2   :  { %10 = vsyncpa [#allocation4], 0  ;;  %s16_s14 = sshll.u32 %s232_s0, 4  ;;  %s196_s15 = smov [#allocation2]   ;;  %s17_s14 = int_to_ptr.hbm [resolvable:$true] %s16_s14 }
   0x3   :  { %s18_s16 = sshll.u32 %s196_s15, 4  ;;  %s33_s19 = sshll.u32 %s233_s1, 4  ;;  %s19_s16 = int_to_ptr.vmem [resolvable:$true] %s18_s16  ;;  %s34_s19 = int_to_ptr.hbm [resolvable:$true] %s33_s19 }
   0x4   :  { %21 = dma.hbm_to_vmem [thread:$0]  %s17_s14, 64, %s19_s16, [#allocation3]  }
   0x5   :  { %s197_s20 = smov [#allocation5]  }
   0x6   :  { %s35_s21 = sshll.u32 %s197_s20, 4  ;;  %s36_s21 = int_to_ptr.vmem [resolvable:$true] %s35_s21 }
   0x7   :  { %38 = dma.hbm_to_vmem [thread:$0]  %s34_s19, 32, %s36_s21, [#allocation6]  }
   0x8   :  { %190 = dma.done.wait [#allocation3], 64  }
   0x9   :  { %191 = vsyncadd [#allocation3], 4294967232 }
   0xa   :  { %192 = dma.done.wait [#allocation6], 32  }
   0xb   :  { %193 = vsyncadd [#allocation6], 4294967264  ;;  %v53_v0 = vld [vmem:[#allocation2] sm:$0xf]  ;;  %s198_s0 = smov 1   ;;  %v75_v3 = vlaneseq  ;;  %vm85_vm1 = vcmask 1041408  }
   0xc   :  { %66 = vst [vmem:[#allocation1] ss:$4 sm:$0xff] %v53_v0  ;;  %v56_v6 = vld [vmem:[%s234_s2] sm:$0x3]  ;;  %s199_s23 = smov [#allocation7]   ;;  %s101_s27 = sshll.u32 %s235_s3, 4  ;;  %s102_s27 = int_to_ptr.hbm [resolvable:$true] %s101_s27 }
   0xd   :  { %v76_v5 = vand.u32 127, %v75_v3  ;;  %v90_v11 = vmul.f32 0.97, %v56_v6  ;;  %s99_s24 = sshll.u32 %s199_s23, 4  ;;  %vm92_vm2 = vcmask 1024   ;;  %s100_s24 = int_to_ptr.vmem [resolvable:$true] %s99_s24 }
   0xf   :  { %vm77_vm0 = vcmp.lt.s32.totalorder %v76_v5, 1  ;;  %v91_v15 = vsub.f32 %v53_v0, %v90_v11 }
  0x13   :  { %v67_v1 = vld.sshfl [vmem:[#allocation1] sm:$0xff pattern:$0x73625140]  ;;  %v68_v2 = vld.sshfl [vmem:[#allocation1 + $0x8] sm:$0xff pattern:$0x73625140] }
  0x14   :  { %71 = vrot.lane.b32.xlu0 %v67_v1, %s198_s0 }
  0x1c   :  { %73 = vrot.lane.b32.xlu0 %v68_v2, %s198_s0 }
  0x86   :  { %v72_v4 = vpop.permute.xlu0 %71 }
  0x8e   :  { %v74_v7 = vpop.permute.xlu0 %73 }
  0x8f   :  { %v78_v8 = vsel %vm77_vm0, %v72_v4, %v74_v7  ;;  %v79_v9 = vsel %vm77_vm0, %v74_v7, %v72_v4 }
  0x90   :  { %v81_v10 = vmul.f32 0.97, %v78_v8  ;;  %v80_v12 = vmul.f32 0.97, %v79_v9 }
  0x92   :  { %v84_v13 = vrot.slane %v81_v10, 6 }
  0x94   :  { %v86_v14 = vsel %vm85_vm1, %v80_v12, %v84_v13 }
  0x95   :  { %v88_v16 = vsub.f32 %v53_v0, %v86_v14 }
  0x97   :  { %89 = vst [vmem:[#allocation7] sm:$0xf] %v88_v16 }
  0x98   :  { %93 = vst.msk [vmem:[#allocation7] sm:$0x3] %vm92_vm2, %v91_v15 }
  0x99   :  { %104 = dma.vmem_to_hbm [thread:$0]  %s100_s24, 64, %s102_s27, [#allocation4]  }
  0x9a   :  { %194 = dma.done.wait [#allocation4], 64  }
  0x9b   :  { %195 = vsyncadd [#allocation4], 4294967232 }
  0x9c   :  { %109 = vsyncpa [#allocation3], 1 }
  0x9d   :  { %110 = vsyncpa [#allocation6], 1 }
  0x9e   :  { %111 = vsyncpa [#allocation4], 1 }

</bundles_post_ra>
